<compile_context>
chip_gen: v6e
topology: v6e:2x2x1
jax: 0.10.0
libtpu: 0.0.40
codegen_flags: <defaults>
</compile_context>

<pallas_src>
import functools

import jax
import jax.numpy as jnp
from jax import lax
from jax.experimental import pallas as pl
from jax.experimental.pallas import tpu as pltpu

BN_EPS = 1e-5
BN_SCALE = float(1.0 / jnp.sqrt(jnp.float32(1.0 + BN_EPS)))


# ------------------------------ layout helpers ------------------------------

def _round_up(x, m):
    return (x + m - 1) // m * m


def _geometry(H, W, k, s):
    """Geometry of the stride-phase-split, flattened (C, M) conv layout."""
    p = k // 2
    Ho = (H + 2 * p - k) // s + 1          # conv output extents
    Wo = (W + 2 * p - k) // s + 1
    Hps = Ho + (k - 1) // s                # per-phase grid extents
    Wps = Wo + (k - 1) // s
    Hp, Wp = s * Hps, s * Wps              # padded image extents
    assert Hp - H - p >= 0 and Wp - W - p >= 0
    M1 = s * s * Hps * Wps                 # flattened phase-split length
    L = Ho * Wps                           # output rows (incl. Wps-Wo garbage cols)
    Lp = _round_up(L, 128)                 # lane-dense output width
    max_start = (s * s - 1) * Hps * Wps + ((k - 1) // s) * Wps + (k - 1) // s
    M1p = _round_up(max(M1, max_start + Lp), 128)   # guard region for tap slices
    return dict(p=p, Ho=Ho, Wo=Wo, Hps=Hps, Wps=Wps, Hp=Hp, Wp=Wp,
                M1=M1, M1p=M1p, L=L, Lp=Lp)


def _prep_input(x_nchw, s, g):
    """NCHW -> zero-padded, stride-phase-split, flattened (N, C, M) layout.

    Element [n, c, (a*s+b)*Hps*Wps + i*Wps + j] == x_pad[n, c, s*i+a, s*j+b],
    so any stride-s KxK depthwise tap is one contiguous lane slice.
    """
    N, C, H, W = x_nchw.shape
    xp = jnp.pad(x_nchw, ((0, 0), (0, 0),
                          (g["p"], g["Hp"] - H - g["p"]),
                          (g["p"], g["Wp"] - W - g["p"])))
    xp = xp.reshape(N, C, g["Hps"], s, g["Wps"], s)      # [n, c, i, a, j, b]
    xp = xp.transpose(0, 1, 3, 5, 2, 4)                  # [n, c, a, b, i, j]
    xp = xp.reshape(N, C, g["M1"])
    return jnp.pad(xp, ((0, 0), (0, 0), (0, g["M1p"] - g["M1"])))


def _extract_output(y, g, C):
    """(N, C_pad, Lp) kernel output -> NCHW (N, C, Ho, Wo).  No transpose."""
    N = y.shape[0]
    y = y[:, :C, :g["L"]].reshape(N, C, g["Ho"], g["Wps"])
    return y[:, :, :, :g["Wo"]]


# ------------------------------ weight folding -------------------------------

def _fold_pw(w, scale, rows_p, cols_p=None):
    """(Cin, Cout) 1x1 weight + BN scale -> zero-padded (Cout_p, Cin_p) bf16."""
    wt = (w * scale[None, :]).T
    rows, cols = wt.shape
    if cols_p is None:
        cols_p = cols
    wt = jnp.pad(wt, ((0, rows_p - rows), (0, cols_p - cols)))
    return wt.astype(jnp.bfloat16)


def _fold_dw(w, scale, k, rows_p):
    """(k, k, 1, C) depthwise weight + BN scale -> zero-padded (C_p, k*k) f32."""
    wf = w.reshape(k * k, -1).T * scale[:, None]
    wf = jnp.pad(wf, ((0, rows_p - wf.shape[0]), (0, 0)))
    return wf.astype(jnp.float32)


def _vmem_limit(Cin, Cmid_p, couts, g):
    """Scoped-VMEM request sized from the actual (8,128)-padded buffers."""
    tile = lambda r, c, b: _round_up(max(r, 8), 8) * _round_up(c, 128) * b
    est = 2 * tile(Cin, g["M1p"], 2)                       # input, double-buffered bf16
    est += tile(Cmid_p, g["M1p"], 4)                       # mid scratch f32
    est += sum(2 * tile(c, g["Lp"], 4) for c in couts)     # outputs, double-buffered
    est += 2 * (1 << 20)                                   # weights + headroom
    return int(min(max(2 * est, 4 << 20), 64 << 20))


# ------------------------------ Pallas kernels ------------------------------

def _dw_taps(src_ref, wd_ref, *, k, s, Hps, Wps, Lp):
    """Depthwise KxK conv, stride s, on the (C, M) phase-split layout.

    Each tap is one contiguous (C, Lp) lane slice; per-channel weights
    broadcast along lanes.  Accumulation is f32 (v5e has no bf16 VALU).
    Columns >= Wo of each output row (and lanes >= L) are garbage and are
    dropped on the host; the M1p guard padding keeps every read in-bounds.
    """
    acc = None
    for kh in range(k):
        for kw in range(k):
            start = (((kh % s) * s + (kw % s)) * Hps * Wps
                     + (kh // s) * Wps + (kw // s))
            sl = src_ref[:, pl.ds(start, Lp)].astype(jnp.float32)
            term = sl * wd_ref[:, pl.ds(kh * k + kw, 1)]        # (C,Lp) * (C,1)
            acc = term if acc is None else acc + term
    return acc


def _main_branch(x_ref, w1_ref, wd_ref, w2_ref, mid_ref, geo):
    # pw1 (+folded BN) + ReLU -> depthwise (+folded BN) -> pw2 (+folded BN) + ReLU
    mid_ref[...] = jnp.maximum(
        jnp.dot(w1_ref[...], x_ref[...], preferred_element_type=jnp.float32), 0.0)
    acc = _dw_taps(mid_ref, wd_ref, **geo)
    return jnp.maximum(
        jnp.dot(w2_ref[...], acc.astype(jnp.bfloat16),
                preferred_element_type=jnp.float32), 0.0)


def _cb_kernel_s1(x_ref, w1_ref, wd_ref, w2_ref, o_ref, mid_ref, *, geo):
    o_ref[...] = _main_branch(x_ref, w1_ref, wd_ref, w2_ref, mid_ref, geo
                              ).astype(o_ref.dtype)


def _cb_kernel_s2(x_ref, w1_ref, wd_ref, w2_ref, wdp_ref, wp_ref,
                  om_ref, op_ref, mid_ref, *, geo):
    om_ref[...] = _main_branch(x_ref, w1_ref, wd_ref, w2_ref, mid_ref, geo
                               ).astype(om_ref.dtype)
    # projection branch: depthwise (+folded BN) -> 1x1 (+folded BN) -> ReLU
    accp = _dw_taps(x_ref, wdp_ref, **geo)
    op_ref[...] = jnp.maximum(
        jnp.dot(wp_ref[...], accp.astype(jnp.bfloat16),
                preferred_element_type=jnp.float32), 0.0).astype(op_ref.dtype)


# ------------------------------ forward wrapper ------------------------------

def init_choice_block_params(key, in_channels, out_channels, kernel, stride):
    mid = out_channels // 2
    out_main = out_channels - in_channels
    ks = jax.random.split(key, 5)
    bn = lambda c: jnp.full((c,), BN_SCALE, jnp.float32)
    p = {
        "main_w1": 0.3 * jax.random.normal(ks[0], (in_channels, mid), jnp.float32),
        "main_s1": bn(mid),
        "main_wdw": 0.3 * jax.random.normal(ks[1], (kernel, kernel, 1, mid), jnp.float32),
        "main_s2": bn(mid),
        "main_w2": 0.3 * jax.random.normal(ks[2], (mid, out_main), jnp.float32),
        "main_s3": bn(out_main),
    }
    if stride == 2:
        p.update({
            "proj_wdw": 0.3 * jax.random.normal(ks[3], (kernel, kernel, 1, in_channels), jnp.float32),
            "proj_s1": bn(in_channels),
            "proj_w1": 0.3 * jax.random.normal(ks[4], (in_channels, in_channels), jnp.float32),
            "proj_s2": bn(in_channels),
        })
    return p


def choice_block_forward(x_nchw, params, *, kernel, stride):
    """Choice_Block.forward.  x_nchw: (N, C, H, W) float32 -> NCHW float32."""
    k, s = kernel, stride
    N, _, H, W = x_nchw.shape
    g = _geometry(H, W, k, s)

    Cin, Cmid = params["main_w1"].shape
    Cout = params["main_w2"].shape[1]
    Cmid_p, Cout_p = _round_up(Cmid, 8), _round_up(Cout, 8)

    # fold eval-mode BatchNorm (pure per-channel scale) into the conv weights
    w1t = _fold_pw(params["main_w1"], params["main_s1"], Cmid_p)            # (Cmid_p, Cin)  bf16
    wdf = _fold_dw(params["main_wdw"], params["main_s2"], k, Cmid_p)        # (Cmid_p, k*k)  f32
    w2t = _fold_pw(params["main_w2"], params["main_s3"], Cout_p, Cmid_p)    # (Cout_p, Cmid_p) bf16

    geo = dict(k=k, s=s, Hps=g["Hps"], Wps=g["Wps"], Lp=g["Lp"])
    x_bf16 = x_nchw.astype(jnp.bfloat16)

    if s == 1:
        # channel_shuffle: even channels feed cb_main, odd channels pass through
        assert x_nchw.shape[1] % 4 == 0
        x1 = x_bf16[:, 0::2]
        x2 = x_nchw[:, 1::2]                    # passthrough stays exact f32
        xp = _prep_input(x1, s, g)
        cparams = pltpu.CompilerParams(
            dimension_semantics=("parallel",),
            vmem_limit_bytes=_vmem_limit(Cin, Cmid_p, [Cout_p], g))
        y_main = pl.pallas_call(
            functools.partial(_cb_kernel_s1, geo=geo),
            out_shape=jax.ShapeDtypeStruct((N, Cout_p, g["Lp"]), jnp.float32),
            grid=(N,),
            in_specs=[
                pl.BlockSpec((None, Cin, g["M1p"]), lambda n: (n, 0, 0)),
                pl.BlockSpec((Cmid_p, Cin), lambda n: (0, 0)),
                pl.BlockSpec((Cmid_p, k * k), lambda n: (0, 0)),
                pl.BlockSpec((Cout_p, Cmid_p), lambda n: (0, 0)),
            ],
            out_specs=pl.BlockSpec((None, Cout_p, g["Lp"]), lambda n: (n, 0, 0)),
            scratch_shapes=[pltpu.VMEM((Cmid_p, g["M1p"]), jnp.float32)],
            compiler_params=cparams,
        )(xp, w1t, wdf, w2t)
        return jnp.concatenate([_extract_output(y_main, g, Cout), x2], axis=1)

    # stride == 2: both branches consume the same prepared input -> one kernel.
    Cprj_p = _round_up(Cin, 8)
    wdpf = _fold_dw(params["proj_wdw"], params["proj_s1"], k, Cin)          # (Cin, k*k)   f32
    wpt = _fold_pw(params["proj_w1"], params["proj_s2"], Cprj_p)            # (Cprj_p, Cin) bf16
    xp = _prep_input(x_bf16, s, g)
    cparams = pltpu.CompilerParams(
        dimension_semantics=("parallel",),
        vmem_limit_bytes=_vmem_limit(Cin, Cmid_p, [Cout_p, Cprj_p], g))
    y_main, y_proj = pl.pallas_call(
        functools.partial(_cb_kernel_s2, geo=geo),
        out_shape=(jax.ShapeDtypeStruct((N, Cout_p, g["Lp"]), jnp.float32),
                   jax.ShapeDtypeStruct((N, Cprj_p, g["Lp"]), jnp.float32)),
        grid=(N,),
        in_specs=[
            pl.BlockSpec((None, Cin, g["M1p"]), lambda n: (n, 0, 0)),
            pl.BlockSpec((Cmid_p, Cin), lambda n: (0, 0)),
            pl.BlockSpec((Cmid_p, k * k), lambda n: (0, 0)),
            pl.BlockSpec((Cout_p, Cmid_p), lambda n: (0, 0)),
            pl.BlockSpec((Cin, k * k), lambda n: (0, 0)),
            pl.BlockSpec((Cprj_p, Cin), lambda n: (0, 0)),
        ],
        out_specs=(pl.BlockSpec((None, Cout_p, g["Lp"]), lambda n: (n, 0, 0)),
                   pl.BlockSpec((None, Cprj_p, g["Lp"]), lambda n: (n, 0, 0))),
        scratch_shapes=[pltpu.VMEM((Cmid_p, g["M1p"]), jnp.float32)],
        compiler_params=cparams,
    )(xp, w1t, wdf, w2t, wdpf, wpt)
    return jnp.concatenate([_extract_output(y_main, g, Cout),
                            _extract_output(y_proj, g, Cin)], axis=1)


# ----------------------------- pure-JAX reference ----------------------------

def _conv_ref(x, w_oihw, stride, pad, groups):
    return lax.conv_general_dilated(
        x, w_oihw, window_strides=(stride, stride),
        padding=((pad, pad), (pad, pad)),
        dimension_numbers=("NCHW", "OIHW", "NCHW"),
        feature_group_count=groups)


def choice_block_ref(x, params, *, kernel, stride):
    pad = kernel // 2
    bn = lambda z: z * BN_SCALE
    relu = lambda z: jnp.maximum(z, 0.0)
    pw = lambda z, w: _conv_ref(z, jnp.transpose(w, (1, 0))[:, :, None, None], 1, 0, 1)
    dw = lambda z, w, s: _conv_ref(z, jnp.transpose(w, (3, 2, 0, 1)), s, pad, z.shape[1])

    def cb_main(z):
        h = relu(bn(pw(z, params["main_w1"])))
        h = bn(dw(h, params["main_wdw"], stride))
        h = relu(bn(pw(h, params["main_w2"])))
        return h

    if stride == 1:
        x1, x2 = x[:, 0::2], x[:, 1::2]
        return jnp.concatenate([cb_main(x1), x2], axis=1)
    proj = relu(bn(pw(bn(dw(x, params["proj_wdw"], stride)), params["proj_w1"])))
    return jnp.concatenate([cb_main(x), proj], axis=1)


# ----------------------------------- main ------------------------------------

if __name__ == "__main__":
    key = jax.random.PRNGKey(0)
    k_x1, k_x2, k_p1, k_p2 = jax.random.split(key, 4)

    # Tolerances account for the deliberate bf16 cast of activations / matmul
    # weights (f32 accumulation in the MXU); indexing/layout bugs would show
    # up as O(1) errors, far outside these bounds.
    RTOL, ATOL = 2e-2, 5e-2

    # stride=1 block: in_channels=4, out_channels=8, kernel=3
    # (channel_shuffle requires the input to carry 2*in_channels channels)
    x_s1 = jax.random.normal(k_x1, (2, 8, 16, 16), jnp.float32)
    p_s1 = init_choice_block_params(k_p1, 4, 8, 3, 1)
    fwd_s1 = jax.jit(functools.partial(choice_block_forward, kernel=3, stride=1))
    y_s1 = jax.block_until_ready(fwd_s1(x_s1, p_s1))
    r_s1 = choice_block_ref(x_s1, p_s1, kernel=3, stride=1)
    assert y_s1.shape == (2, 8, 16, 16), y_s1.shape
    assert jnp.allclose(y_s1, r_s1, rtol=RTOL, atol=ATOL), \
        float(jnp.max(jnp.abs(y_s1 - r_s1)))

    # stride=2 block: in_channels=4, out_channels=16, kernel=3
    x_s2 = jax.random.normal(k_x2, (2, 4, 16, 16), jnp.float32)
    p_s2 = init_choice_block_params(k_p2, 4, 16, 3, 2)
    fwd_s2 = jax.jit(functools.partial(choice_block_forward, kernel=3, stride=2))
    y_s2 = jax.block_until_ready(fwd_s2(x_s2, p_s2))
    r_s2 = choice_block_ref(x_s2, p_s2, kernel=3, stride=2)
    assert y_s2.shape == (2, 16, 8, 8), y_s2.shape
    assert jnp.allclose(y_s2, r_s2, rtol=RTOL, atol=ATOL), \
        float(jnp.max(jnp.abs(y_s2 - r_s2)))

    print("KERNEL_OK")
</pallas_src>

<mosaic_0001>
module attributes {stable_mosaic.version = 11 : i64} {
  func.func @_cb_kernel_s1(%arg0: i32, %arg1: memref<1x4x512xbf16, #tpu.memory_space<vmem>>, %arg2: memref<8x4xbf16, #tpu.memory_space<vmem>>, %arg3: memref<8x9xf32, #tpu.memory_space<vmem>>, %arg4: memref<8x8xbf16, #tpu.memory_space<vmem>>, %arg5: memref<1x8x384xf32, #tpu.memory_space<vmem>>, %arg6: memref<8x512xf32, #tpu.memory_space<vmem>>) attributes {dimension_semantics = [#tpu.dimension_semantics<parallel>], iteration_bounds = array<i64: 2>, scalar_prefetch = 0 : i64, scratch_operands = 1 : i64, tpu.core_type = #tpu.core_type<tc>, window_params = [{transform_indices = @transform_0, window_bounds = array<i64: 1, 4, 512>}, {pipeline_mode = #tpu.pipeline_mode<synchronous>, transform_indices = @transform_1, window_bounds = array<i64: 8, 4>}, {pipeline_mode = #tpu.pipeline_mode<synchronous>, transform_indices = @transform_2, window_bounds = array<i64: 8, 9>}, {pipeline_mode = #tpu.pipeline_mode<synchronous>, transform_indices = @transform_3, window_bounds = array<i64: 8, 8>}, {transform_indices = @transform_4, window_bounds = array<i64: 1, 8, 384>}]} {
    %c0 = arith.constant 0 : index
    %c0_0 = arith.constant 0 : index
    %0 = vector.load %arg2[%c0, %c0_0] : memref<8x4xbf16, #tpu.memory_space<vmem>>, vector<8x4xbf16>
    %c0_1 = arith.constant 0 : index
    %c0_2 = arith.constant 0 : index
    %c0_3 = arith.constant 0 : index
    %1 = vector.load %arg1[%c0_1, %c0_2, %c0_3] : memref<1x4x512xbf16, #tpu.memory_space<vmem>>, vector<1x4x512xbf16>
    %2 = vector.shape_cast %1 : vector<1x4x512xbf16> to vector<4x512xbf16>
    %cst = arith.constant dense<0.000000e+00> : vector<8x512xf32>
    %3 = tpu.matmul %0, %2, %cst {dimension_numbers = #tpu.dot_dimension_numbers<[1], [0], [0], [1], [0, 0, 1, 1], [], []>} : vector<8x4xbf16>, vector<4x512xbf16>, vector<8x512xf32> -> vector<8x512xf32>
    %cst_4 = arith.constant 0.000000e+00 : f32
    %4 = vector.broadcast %cst_4 : f32 to vector<8x512xf32>
    %5 = arith.maximumf %3, %4 : vector<8x512xf32>
    %c0_5 = arith.constant 0 : index
    %c0_6 = arith.constant 0 : index
    %6 = vector.load %arg6[%c0_5, %c0_6] : memref<8x512xf32, #tpu.memory_space<vmem>>, vector<8x512xf32>
    tpu.vector_store %arg6[%c0_5, %c0_6], %5 {strides = array<i32>} : memref<8x512xf32, #tpu.memory_space<vmem>>, vector<8x512xf32>,
    %c0_7 = arith.constant 0 : index
    %c0_8 = arith.constant 0 : index
    %7 = vector.load %arg6[%c0_7, %c0_8] : memref<8x512xf32, #tpu.memory_space<vmem>>, vector<8x384xf32>
    %c0_9 = arith.constant 0 : index
    %c0_10 = arith.constant 0 : index
    %8 = vector.load %arg3[%c0_9, %c0_10] : memref<8x9xf32, #tpu.memory_space<vmem>>, vector<8x1xf32>
    %9 = vector.broadcast %8 : vector<8x1xf32> to vector<8x384xf32>
    %10 = arith.mulf %7, %9 : vector<8x384xf32>
    %c0_11 = arith.constant 0 : index
    %c1 = arith.constant 1 : index
    %11 = vector.load %arg6[%c0_11, %c1] : memref<8x512xf32, #tpu.memory_space<vmem>>, vector<8x384xf32>
    %c0_12 = arith.constant 0 : index
    %c1_13 = arith.constant 1 : index
    %12 = vector.load %arg3[%c0_12, %c1_13] : memref<8x9xf32, #tpu.memory_space<vmem>>, vector<8x1xf32>
    %13 = vector.broadcast %12 : vector<8x1xf32> to vector<8x384xf32>
    %14 = arith.mulf %11, %13 : vector<8x384xf32>
    %15 = arith.addf %10, %14 : vector<8x384xf32>
    %c0_14 = arith.constant 0 : index
    %c2 = arith.constant 2 : index
    %16 = vector.load %arg6[%c0_14, %c2] : memref<8x512xf32, #tpu.memory_space<vmem>>, vector<8x384xf32>
    %c0_15 = arith.constant 0 : index
    %c2_16 = arith.constant 2 : index
    %17 = vector.load %arg3[%c0_15, %c2_16] : memref<8x9xf32, #tpu.memory_space<vmem>>, vector<8x1xf32>
    %18 = vector.broadcast %17 : vector<8x1xf32> to vector<8x384xf32>
    %19 = arith.mulf %16, %18 : vector<8x384xf32>
    %20 = arith.addf %15, %19 : vector<8x384xf32>
    %c0_17 = arith.constant 0 : index
    %c18 = arith.constant 18 : index
    %21 = vector.load %arg6[%c0_17, %c18] : memref<8x512xf32, #tpu.memory_space<vmem>>, vector<8x384xf32>
    %c0_18 = arith.constant 0 : index
    %c3 = arith.constant 3 : index
    %22 = vector.load %arg3[%c0_18, %c3] : memref<8x9xf32, #tpu.memory_space<vmem>>, vector<8x1xf32>
    %23 = vector.broadcast %22 : vector<8x1xf32> to vector<8x384xf32>
    %24 = arith.mulf %21, %23 : vector<8x384xf32>
    %25 = arith.addf %20, %24 : vector<8x384xf32>
    %c0_19 = arith.constant 0 : index
    %c19 = arith.constant 19 : index
    %26 = vector.load %arg6[%c0_19, %c19] : memref<8x512xf32, #tpu.memory_space<vmem>>, vector<8x384xf32>
    %c0_20 = arith.constant 0 : index
    %c4 = arith.constant 4 : index
    %27 = vector.load %arg3[%c0_20, %c4] : memref<8x9xf32, #tpu.memory_space<vmem>>, vector<8x1xf32>
    %28 = vector.broadcast %27 : vector<8x1xf32> to vector<8x384xf32>
    %29 = arith.mulf %26, %28 : vector<8x384xf32>
    %30 = arith.addf %25, %29 : vector<8x384xf32>
    %c0_21 = arith.constant 0 : index
    %c20 = arith.constant 20 : index
    %31 = vector.load %arg6[%c0_21, %c20] : memref<8x512xf32, #tpu.memory_space<vmem>>, vector<8x384xf32>
    %c0_22 = arith.constant 0 : index
    %c5 = arith.constant 5 : index
    %32 = vector.load %arg3[%c0_22, %c5] : memref<8x9xf32, #tpu.memory_space<vmem>>, vector<8x1xf32>
    %33 = vector.broadcast %32 : vector<8x1xf32> to vector<8x384xf32>
    %34 = arith.mulf %31, %33 : vector<8x384xf32>
    %35 = arith.addf %30, %34 : vector<8x384xf32>
    %c0_23 = arith.constant 0 : index
    %c36 = arith.constant 36 : index
    %36 = vector.load %arg6[%c0_23, %c36] : memref<8x512xf32, #tpu.memory_space<vmem>>, vector<8x384xf32>
    %c0_24 = arith.constant 0 : index
    %c6 = arith.constant 6 : index
    %37 = vector.load %arg3[%c0_24, %c6] : memref<8x9xf32, #tpu.memory_space<vmem>>, vector<8x1xf32>
    %38 = vector.broadcast %37 : vector<8x1xf32> to vector<8x384xf32>
    %39 = arith.mulf %36, %38 : vector<8x384xf32>
    %40 = arith.addf %35, %39 : vector<8x384xf32>
    %c0_25 = arith.constant 0 : index
    %c37 = arith.constant 37 : index
    %41 = vector.load %arg6[%c0_25, %c37] : memref<8x512xf32, #tpu.memory_space<vmem>>, vector<8x384xf32>
    %c0_26 = arith.constant 0 : index
    %c7 = arith.constant 7 : index
    %42 = vector.load %arg3[%c0_26, %c7] : memref<8x9xf32, #tpu.memory_space<vmem>>, vector<8x1xf32>
    %43 = vector.broadcast %42 : vector<8x1xf32> to vector<8x384xf32>
    %44 = arith.mulf %41, %43 : vector<8x384xf32>
    %45 = arith.addf %40, %44 : vector<8x384xf32>
    %c0_27 = arith.constant 0 : index
    %c38 = arith.constant 38 : index
    %46 = vector.load %arg6[%c0_27, %c38] : memref<8x512xf32, #tpu.memory_space<vmem>>, vector<8x384xf32>
    %c0_28 = arith.constant 0 : index
    %c8 = arith.constant 8 : index
    %47 = vector.load %arg3[%c0_28, %c8] : memref<8x9xf32, #tpu.memory_space<vmem>>, vector<8x1xf32>
    %48 = vector.broadcast %47 : vector<8x1xf32> to vector<8x384xf32>
    %49 = arith.mulf %46, %48 : vector<8x384xf32>
    %50 = arith.addf %45, %49 : vector<8x384xf32>
    %c0_29 = arith.constant 0 : index
    %c0_30 = arith.constant 0 : index
    %51 = vector.load %arg4[%c0_29, %c0_30] : memref<8x8xbf16, #tpu.memory_space<vmem>>, vector<8x8xbf16>
    %52 = arith.truncf %50 : vector<8x384xf32> to vector<8x384xbf16>
    %cst_31 = arith.constant dense<0.000000e+00> : vector<8x384xf32>
    %53 = tpu.matmul %51, %52, %cst_31 {dimension_numbers = #tpu.dot_dimension_numbers<[1], [0], [0], [1], [0, 0, 1, 1], [], []>} : vector<8x8xbf16>, vector<8x384xbf16>, vector<8x384xf32> -> vector<8x384xf32>
    %cst_32 = arith.constant 0.000000e+00 : f32
    %54 = vector.broadcast %cst_32 : f32 to vector<8x384xf32>
    %55 = arith.maximumf %53, %54 : vector<8x384xf32>
    %c0_33 = arith.constant 0 : index
    %c0_34 = arith.constant 0 : index
    %c0_35 = arith.constant 0 : index
    %56 = vector.load %arg5[%c0_33, %c0_34, %c0_35] : memref<1x8x384xf32, #tpu.memory_space<vmem>>, vector<1x8x384xf32>
    %57 = vector.shape_cast %56 : vector<1x8x384xf32> to vector<8x384xf32>
    %58 = vector.shape_cast %55 : vector<8x384xf32> to vector<1x8x384xf32>
    tpu.vector_store %arg5[%c0_33, %c0_34, %c0_35], %58 {strides = array<i32>} : memref<1x8x384xf32, #tpu.memory_space<vmem>>, vector<1x8x384xf32>,
    return
  }
  func.func @transform_0(%arg0: i32) -> (i32, i32, i32) {
    %c0_i32 = arith.constant 0 : i32
    %c0_i32_0 = arith.constant 0 : i32
    %c0_i32_1 = arith.constant 0 : i32
    return %arg0, %c0_i32, %c0_i32_0 : i32, i32, i32
  }
  func.func @transform_1(%arg0: i32) -> (i32, i32) {
    %c0_i32 = arith.constant 0 : i32
    %c0_i32_0 = arith.constant 0 : i32
    %c0_i32_1 = arith.constant 0 : i32
    return %c0_i32, %c0_i32_0 : i32, i32
  }
  func.func @transform_2(%arg0: i32) -> (i32, i32) {
    %c0_i32 = arith.constant 0 : i32
    %c0_i32_0 = arith.constant 0 : i32
    %c0_i32_1 = arith.constant 0 : i32
    return %c0_i32, %c0_i32_0 : i32, i32
  }
  func.func @transform_3(%arg0: i32) -> (i32, i32) {
    %c0_i32 = arith.constant 0 : i32
    %c0_i32_0 = arith.constant 0 : i32
    %c0_i32_1 = arith.constant 0 : i32
    return %c0_i32, %c0_i32_0 : i32, i32
  }
  func.func @transform_4(%arg0: i32) -> (i32, i32, i32) {
    %c0_i32 = arith.constant 0 : i32
    %c0_i32_0 = arith.constant 0 : i32
    %c0_i32_1 = arith.constant 0 : i32
    return %arg0, %c0_i32, %c0_i32_0 : i32, i32, i32
  }
}

</mosaic_0001>

<bundles_post_ra>
// kernel: choice_block_forward.1
= control target key start
LH: loop header
LB: loop body
LE: loop exit
PB: predicated region body
PF: predicated region fallthrough
CT: control target
= control target key end

     0   :  { %s861_s15 = smov 0   ;;  %s1011_s0 = inlined_call_operand.vmem [shape: bf16[2,4,512], index: 0, kind: input, shape index: {}]   ;;  %s1012_s1 = inlined_call_operand.vmem [shape: bf16[8,4], index: 1, kind: input, shape index: {}]   ;;  %s1013_s2 = inlined_call_operand.vmem [shape: f32[8,9], index: 2, kind: input, shape index: {}]   ;;  %s1014_s3 = inlined_call_operand.vmem [shape: bf16[8,8], index: 3, kind: input, shape index: {}]   ;;  %s1015_s4 = inlined_call_operand.vmem [shape: f32[2,8,384], index: 4, kind: output, shape index: {}]  }
   0x1 LB: > { %s742_s16 = sadd.s32 4294967295, %s814_s15   ;;  %p746_p0 = scmp.ge.s32.totalorder %s814_s15, 1  ;;  %s814_s15 = sphi %s861_s15, %s14_s15  }
   0x2   : > { %p162_p1 = scmp.lt.s32.totalorder %s814_s15, 3 }
   0x4   : > { %p163_p2 = pnand %p746_p0, %p162_p1 }
   0x5   : > { %p188_p3 = scmp.lt.s32.totalorder (!%p163_p2), %s742_s16, 1  ;;  %s826_s25 = smov (!%p163_p2), 126  }
   0x6   : > { %166 = sbr.rel (%p163_p2) target bundleno = 610 (0x262), region = 36  ;;  %s827_s26 = smov (!%p163_p2), 127  }
   0x7   : > { %s828_s27 = smov (!%p163_p2), 110   ;;  %s829_s28 = smov (!%p163_p2), 109  }
   0x8   : > { %s830_s29 = smov (!%p163_p2), 108   ;;  %s831_s30 = smov (!%p163_p2), 92  }
   0x9   : > { %s832_s5 = smov (!%p163_p2), 91   ;;  %s833_s6 = smov (!%p163_p2), 90  }
   0xb   : > { %v206_v0 = vlaneseq  ;;  %v329_v1 = vld [vmem:[%s1013_s2] sm:$0xff]  ;;  %v816_v2 = vmov 1983009808   ;;  %v817_v4 = vmov 0   ;;  %s1017_s16 = smov (!%p188_p3, %s742_s16), 1  ;;  %v818_v6 = vmov 3  }
   0xc   : > { %v204_v3 = vunpack.c.l.s4 %v816_v2  ;;  %268 = vmatprep.mubr.bf16.mxu0 %v817_v4  ;;  %309 = vmatprep.mubr.bf16.mxu1 %v817_v4  ;;  %v819_v7 = vmov 1   ;;  %s759_s19 = sshll.u32 %s1017_s16, 3  ;;  %vm223_vm0 = vcmask 1041408   ;;  %v820_v13 = vmov 4   ;;  %v199_v20 = vld [vmem:[%s1012_s1] sm:$0xf] }
   0xd   : > { %v207_v5 = vshrl.u32 %v206_v0, 7  ;;  %799 = vset.pattern.permute.xlu1 %v818_v6  ;;  %797 = vset.pattern.permute.xlu0 %v819_v7  ;;  %s192_s22 = scalar_lea.vmem %s1011_s0, %s759_s19  ;;  %v821_v14 = vmov 2   ;;  %vm219_vm1 = vcmask 31744   ;;  %v822_v21 = vmov 5   ;;  %s768_s9 = smul.u32 24, %s1017_s16 }
   0xe   : > { %v205_v8 = vunpack.c.0.s8 %v204_v3  ;;  %403 = vperm.xlu1 %799, %v329_v1   ;;  %343 = vperm.xlu0 %797, %v329_v1   ;;  %v200_v10 = vld [vmem:[%s192_s22] sm:$0xff]  ;;  %v823_v22 = vmov 6   ;;  %v824_v23 = vmov 7   ;;  %v825_v24 = vmov 8  }
   0xf   : > { %v202_v12 = vcombine.high %v200_v10, %v200_v10  ;;  %vm835_vm2 = vmmov 0   ;;  %vm362_vm3 = vcmask 1039360   ;;  %vm392_vm4 = vcmask 1031168   ;;  %s197_s12 = scalar_lea.vmem %s1015_s4, %s768_s9 }
  0x10   : > { %v208_v9 = vsub.s32 %v205_v8, %v207_v5  ;;  %vm422_vm5 = vcmask 900096   ;;  %vm452_vm6 = vcmask 891904   ;;  %vm482_vm7 = vcmask 883712  }
  0x11   : > { %vm512_vm8 = vcmask 752640   ;;  %vm542_vm9 = vcmask 744448   ;;  %vm572_vm10 = vcmask 736256   ;;  %vm590_vm11 = vcmask 1043456  }
  0x12   : > { %v209_v11 = vrot.slane %v200_v10, %v208_v9  ;;  %800 = vset.pattern.permute.xlu1 %v820_v13  ;;  %798 = vset.pattern.permute.xlu0 %v821_v14  ;;  %v216_v17 = vrot.slane %v202_v12, %v208_v9  ;;  %vm586_vm12 = vcmask 64512  }
  0x13   : > { %433 = vperm.xlu1 %800, %v329_v1   ;;  %373 = vperm.xlu0 %798, %v329_v1  }
  0x14   : > { %v217_v15 = vcombine.high %v209_v11, %v209_v11  ;;  %v225_v16 = vsel %vm223_vm0, %v209_v11, 0  ;;  %v218_v18 = vcombine.high %v216_v17, %v216_v17  ;;  %v231_v19 = vsel %vm223_vm0, %v216_v17, 0 }
  0x15   : > { %v834_v11 = vmov 0.0  }
  0x16   : > { %750 = vmatprep.subr.msk.bf16.mxu0 %vm223_vm0, %v217_v15  ;;  %752 = vmatprep.subr.msk.bf16.mxu1 %vm223_vm0, %v218_v18 }
  0x17   : > { %251 = vmatpush1.bf16.msra.mxu0 %v225_v16  ;;  %801 = vset.pattern.permute.xlu1 %v822_v21 }
  0x18   : > { %463 = vperm.xlu1 %801, %v329_v1   ;;  %292 = vmatpush1.bf16.msra.mxu1 %v231_v19 }
  0x19   : > { %802 = vset.pattern.permute.xlu0 %v823_v22  ;;  %762 = vmatprep.subr.bf16.mxu1 %v834_v11 }
  0x1a   : > { %751 = vmatmul.mubr.msk.bf16.vlgmr.msra.gmra.mxu0 %vm219_vm1, %v199_v20  ;;  %493 = vperm.xlu0 %802, %v329_v1  }
  0x1b   : > { %632 = vmatprep.mubr.bf16.mxu0 %v817_v4  ;;  %753 = vmatmul.mubr.msk.bf16.vlgmr.msra.gmra.mxu1 %vm219_vm1, %v199_v20 }
  0x1c   : > { %803 = vset.pattern.permute.xlu1 %v824_v23  ;;  %764 = vmatprep.mubr.msk.bf16.mxu1 %vm835_vm2, %v834_v11 }
  0x1d   : > { %523 = vperm.xlu1 %803, %v329_v1  }
  0x1e   : > { %805 = vset.pattern.permute.xlu0 %v817_v4 }
  0x1f   : > { %332 = vperm.xlu0 %805, %v329_v1  }
  0x21   : > { %804 = vset.pattern.permute.xlu1 %v825_v24 }
  0x22   : > { %553 = vperm.xlu1 %804, %v329_v1  }
  0x23   : > { %806 = vset.pattern.permute.xlu0 %v825_v24 }
  0x89   : > { %v885_v25 = vpop.permute.xlu0 %343  ;;  %v887_v26 = vpop.permute.xlu1 %403 }
  0x8e   : > { %v889_v28 = vpop.permute.xlu0 %373  ;;  %v899_v37 = vpop.permute.xlu1 %433 }
  0x93   : > { %v464_v44 = vpop.permute.xlu1 %463 }
  0x95   : > { %v494_v49 = vpop.permute.xlu0 %493 }
  0x98   : > { %v524_v48 = vpop.permute.xlu1 %523 }
  0x9a   : > { %v333_v14 = vpop.permute.xlu0 %332 }
  0x9d   : > { %v554_v53 = vpop.permute.xlu1 %553 }
  0xda   : > { %v270_v27 = vpop.f32.mrf.mxu0 }
  0xdb   : > { %v891_v29 = vmax.f32 %v270_v27, 0.0  ;;  %v311_v31 = vpop.f32.mrf.mxu1 }
  0xdc   : > { %v272_v30 = vpop.f32.mrf.mxu0  ;;  %v929_v55 = vmax.f32 %v311_v31, 0.0 }
  0xdd   : > { %v376_v32 = vmul.f32 %v889_v28, %v891_v29  ;;  %v895_v33 = vmax.f32 %v272_v30, 0.0  ;;  %v313_v35 = vpop.f32.mrf.mxu1  ;;  %v346_v36 = vmul.f32 %v885_v25, %v891_v29  ;;  %v406_v40 = vmul.f32 %v887_v26, %v891_v29 }
  0xde   : > { %v274_v34 = vpop.f32.mrf.mxu0  ;;  %v436_v43 = vmul.f32 %v899_v37, %v891_v29  ;;  %v466_v46 = vmul.f32 %v464_v44, %v891_v29  ;;  %v496_v50 = vmul.f32 %v494_v49, %v891_v29  ;;  %v526_v52 = vmul.f32 %v524_v48, %v891_v29 }
  0xdf   : > { %384 = vrot.lane.b32.xlu0 %v376_v32, %s826_s25  ;;  %354 = vrot.lane.b32.xlu1 %v346_v36, %s827_s26  ;;  %v315_v39 = vpop.f32.mrf.mxu1  ;;  %v347_v41 = vmul.f32 %v885_v25, %v895_v33  ;;  %v377_v45 = vmul.f32 %v889_v28, %v895_v33  ;;  %v407_v47 = vmul.f32 %v887_v26, %v895_v33  ;;  %v321_v61 = vmax.f32 %v313_v35, 0.0 }
  0xe0   : > { %v275_v38 = vpop.f32.mrf.mxu0  ;;  %v437_v51 = vmul.f32 %v899_v37, %v895_v33  ;;  %v467_v54 = vmul.f32 %v464_v44, %v895_v33  ;;  %v556_v56 = vmul.f32 %v554_v53, %v891_v29  ;;  %v497_v57 = vmul.f32 %v494_v49, %v895_v33 }
  0xe1   : > { %v316_v42 = vpop.f32.mrf.mxu1  ;;  %v348_v58 = vmul.f32 %v885_v25, %v929_v55  ;;  %v527_v59 = vmul.f32 %v524_v48, %v895_v33  ;;  %v378_v60 = vmul.f32 %v889_v28, %v929_v55  ;;  %v557_v62 = vmul.f32 %v554_v53, %v895_v33 }
  0xe2   : > { %v408_v63 = vmul.f32 %v887_v26, %v929_v55  ;;  %v349_v0 = vmul.f32 %v885_v25, %v321_v61  ;;  %v438_v1 = vmul.f32 %v899_v37, %v929_v55  ;;  %v379_v2 = vmul.f32 %v889_v28, %v321_v61 }
  0xe3   : > { %414 = vrot.lane.b32.xlu0 %v406_v40, %s828_s27  ;;  %356 = vrot.lane.b32.xlu1 %v347_v41, %s827_s26  ;;  %v468_v3 = vmul.f32 %v464_v44, %v929_v55  ;;  %v409_v4 = vmul.f32 %v887_v26, %v321_v61  ;;  %v498_v5 = vmul.f32 %v494_v49, %v929_v55 }
  0xe4   : > { %v439_v6 = vmul.f32 %v899_v37, %v321_v61  ;;  %v528_v7 = vmul.f32 %v524_v48, %v929_v55  ;;  %v469_v8 = vmul.f32 %v464_v44, %v321_v61  ;;  %v558_v9 = vmul.f32 %v554_v53, %v929_v55 }
  0xe5   : > { %v499_v10 = vmul.f32 %v494_v49, %v321_v61  ;;  %v529_v12 = vmul.f32 %v524_v48, %v321_v61  ;;  %v559_v13 = vmul.f32 %v554_v53, %v321_v61  ;;  %v335_v38 = vmul.f32 %v333_v14, %v891_v29 }
  0xe7   : > { %444 = vrot.lane.b32.xlu0 %v436_v43, %s829_s28  ;;  %386 = vrot.lane.b32.xlu1 %v377_v45, %s826_s25 }
  0xeb   : > { %474 = vrot.lane.b32.xlu0 %v466_v46, %s830_s29  ;;  %416 = vrot.lane.b32.xlu1 %v407_v47, %s828_s27  ;;  %v336_v46 = vmul.f32 %v333_v14, %v895_v33 }
  0xef   : > { %504 = vrot.lane.b32.xlu0 %v496_v50, %s831_s30  ;;  %446 = vrot.lane.b32.xlu1 %v437_v51, %s829_s28 }
  0xf3   : > { %534 = vrot.lane.b32.xlu0 %v526_v52, %s832_s5  ;;  %476 = vrot.lane.b32.xlu1 %v467_v54, %s830_s29 }
  0xf7   : > { %564 = vrot.lane.b32.xlu0 %v556_v56, %s833_s6  ;;  %506 = vrot.lane.b32.xlu1 %v497_v57, %s831_s30 }
  0xfb   : > { %358 = vrot.lane.b32.xlu0 %v348_v58, %s827_s26  ;;  %536 = vrot.lane.b32.xlu1 %v527_v59, %s832_s5 }
  0xff   : > { %388 = vrot.lane.b32.xlu0 %v378_v60, %s826_s25  ;;  %566 = vrot.lane.b32.xlu1 %v557_v62, %s833_s6 }
 0x103   : > { %418 = vrot.lane.b32.xlu0 %v408_v63, %s828_s27  ;;  %360 = vrot.lane.b32.xlu1 %v349_v0, %s827_s26 }
 0x107   : > { %448 = vrot.lane.b32.xlu0 %v438_v1, %s829_s28  ;;  %390 = vrot.lane.b32.xlu1 %v379_v2, %s826_s25 }
 0x10b   : > { %478 = vrot.lane.b32.xlu0 %v468_v3, %s830_s29  ;;  %420 = vrot.lane.b32.xlu1 %v409_v4, %s828_s27  ;;  %v337_v4 = vmul.f32 %v333_v14, %v929_v55 }
 0x10f   : > { %508 = vrot.lane.b32.xlu0 %v498_v5, %s831_s30  ;;  %450 = vrot.lane.b32.xlu1 %v439_v6, %s829_s28 }
 0x113   : > { %538 = vrot.lane.b32.xlu0 %v528_v7, %s832_s5  ;;  %480 = vrot.lane.b32.xlu1 %v469_v8, %s830_s29 }
 0x117   : > { %568 = vrot.lane.b32.xlu0 %v558_v9, %s833_s6  ;;  %510 = vrot.lane.b32.xlu1 %v499_v10, %s831_s30 }
 0x11b   : > { %540 = vrot.lane.b32.xlu1 %v529_v12, %s832_s5 }
 0x11f   : > { %570 = vrot.lane.b32.xlu1 %v559_v13, %s833_s6 }
 0x151   : > { %v385_v15 = vpop.permute.xlu0 %384  ;;  %v355_v16 = vpop.permute.xlu1 %354 }
 0x155   : > { %v415_v17 = vpop.permute.xlu0 %414  ;;  %v357_v18 = vpop.permute.xlu1 %356 }
 0x156   : > { %v363_v36 = vsel %vm362_vm3, %v355_v16, %v357_v18 }
 0x157   : > { %v369_v40 = vadd.f32 %v363_v36, %v335_v38 }
 0x159   : > { %v445_v19 = vpop.permute.xlu0 %444  ;;  %v387_v20 = vpop.permute.xlu1 %386 }
 0x15a   : > { %v393_v39 = vsel %vm392_vm4, %v385_v15, %v387_v20 }
 0x15b   : > { %v399_v45 = vadd.f32 %v393_v39, %v369_v40 }
 0x15d   : > { %v475_v21 = vpop.permute.xlu0 %474  ;;  %v417_v22 = vpop.permute.xlu1 %416 }
 0x15e   : > { %v423_v42 = vsel %vm422_vm5, %v415_v17, %v417_v22 }
 0x15f   : > { %v429_v29 = vadd.f32 %v423_v42, %v399_v45 }
 0x161   : > { %v505_v23 = vpop.permute.xlu0 %504  ;;  %v447_v24 = vpop.permute.xlu1 %446 }
 0x162   : > { %v453_v47 = vsel %vm452_vm6, %v445_v19, %v447_v24 }
 0x163   : > { %v459_v54 = vadd.f32 %v453_v47, %v429_v29 }
 0x165   : > { %v535_v25 = vpop.permute.xlu0 %534  ;;  %v477_v26 = vpop.permute.xlu1 %476 }
 0x166   : > { %v483_v51 = vsel %vm482_vm7, %v475_v21, %v477_v26 }
 0x167   : > { %v489_v58 = vadd.f32 %v483_v51, %v459_v54 }
 0x169   : > { %v565_v27 = vpop.permute.xlu0 %564  ;;  %v507_v28 = vpop.permute.xlu1 %506 }
 0x16a   : > { %v513_v57 = vsel %vm512_vm8, %v505_v23, %v507_v28 }
 0x16b   : > { %v519_v0 = vadd.f32 %v513_v57, %v489_v58 }
 0x16d   : > { %v359_v30 = vpop.permute.xlu0 %358  ;;  %v537_v31 = vpop.permute.xlu1 %536 }
 0x16e   : > { %v364_v43 = vsel %vm362_vm3, %v357_v18, %v359_v30  ;;  %v543_v61 = vsel %vm542_vm9, %v535_v25, %v537_v31 }
 0x16f   : > { %v370_v49 = vadd.f32 %v364_v43, %v336_v46  ;;  %v549_v6 = vadd.f32 %v543_v61, %v519_v0 }
 0x171   : > { %v389_v32 = vpop.permute.xlu0 %388  ;;  %v567_v34 = vpop.permute.xlu1 %566 }
 0x172   : > { %v394_v48 = vsel %vm392_vm4, %v387_v20, %v389_v32  ;;  %v573_v3 = vsel %vm572_vm10, %v565_v27, %v567_v34 }
 0x173   : > { %v400_v56 = vadd.f32 %v394_v48, %v370_v49  ;;  %v579_v13 = vadd.f32 %v573_v3, %v549_v6 }
 0x175   : > { %v419_v35 = vpop.permute.xlu0 %418  ;;  %v361_v37 = vpop.permute.xlu1 %360 }
 0x176   : > { %v424_v52 = vsel %vm422_vm5, %v417_v22, %v419_v35  ;;  %v365_v1 = vsel %vm362_vm3, %v359_v30, %v361_v37  ;;  %v583_v22 = vpack.c.bf16 %v579_v13, %v579_v13 }
 0x177   : > { %v430_v59 = vadd.f32 %v424_v52, %v400_v56  ;;  %v371_v10 = vadd.f32 %v365_v1, %v337_v4 }
 0x179   : > { %v449_v41 = vpop.permute.xlu0 %448  ;;  %v391_v44 = vpop.permute.xlu1 %390 }
 0x17a   : > { %v454_v33 = vsel %vm452_vm6, %v447_v24, %v449_v41  ;;  %v395_v7 = vsel %vm392_vm4, %v389_v32, %v391_v44  ;;  %v592_v32 = vsel %vm590_vm11, %v583_v22, 0 }
 0x17b   : > { %v460_v2 = vadd.f32 %v454_v33, %v430_v59  ;;  %v401_v17 = vadd.f32 %v395_v7, %v371_v10 }
 0x17d   : > { %v479_v50 = vpop.permute.xlu0 %478  ;;  %v421_v53 = vpop.permute.xlu1 %420 }
 0x17e   : > { %v484_v62 = vsel %vm482_vm7, %v477_v26, %v479_v50  ;;  %v425_v15 = vsel %vm422_vm5, %v419_v35, %v421_v53  ;;  %v582_v35 = vld [vmem:[%s1014_s3] sm:$0xf] }
 0x17f   : > { %v490_v8 = vadd.f32 %v484_v62, %v460_v2  ;;  %v431_v14 = vadd.f32 %v425_v15, %v401_v17 }
 0x181   : > { %v509_v60 = vpop.permute.xlu0 %508  ;;  %v451_v63 = vpop.permute.xlu1 %450 }
 0x182   : > { %v514_v5 = vsel %vm512_vm8, %v507_v28, %v509_v60  ;;  %v455_v18 = vsel %vm452_vm6, %v449_v41, %v451_v63 }
 0x183   : > { %v520_v16 = vadd.f32 %v514_v5, %v490_v8  ;;  %v461_v25 = vadd.f32 %v455_v18, %v431_v14 }
 0x185   : > { %v539_v9 = vpop.permute.xlu0 %538  ;;  %v481_v12 = vpop.permute.xlu1 %480 }
 0x186   : > { %v544_v11 = vsel %vm542_vm9, %v537_v31, %v539_v9  ;;  %v485_v23 = vsel %vm482_vm7, %v479_v50, %v481_v12 }
 0x187   : > { %v550_v19 = vadd.f32 %v544_v11, %v520_v16  ;;  %v491_v28 = vadd.f32 %v485_v23, %v461_v25 }
 0x189   : > { %v569_v55 = vpop.permute.xlu0 %568  ;;  %v511_v21 = vpop.permute.xlu1 %510 }
 0x18a   : > { %v574_v20 = vsel %vm572_vm10, %v567_v34, %v569_v55  ;;  %v515_v27 = vsel %vm512_vm8, %v509_v60, %v511_v21 }
 0x18b   : > { %v580_v24 = vadd.f32 %v574_v20, %v550_v19  ;;  %v521_v34 = vadd.f32 %v515_v27, %v491_v28 }
 0x18d   : > { %v584_v26 = vpack.c.bf16 %v580_v24, %v580_v24  ;;  %v541_v30 = vpop.permute.xlu1 %540 }
 0x18e   : > { %v545_v31 = vsel %vm542_vm9, %v539_v9, %v541_v30 }
 0x18f   : > { %754 = vmatprep.subr.msk.bf16.mxu0 %vm590_vm11, %v584_v26  ;;  %v551_v36 = vadd.f32 %v545_v31, %v521_v34 }
 0x190   : > { %615 = vmatpush1.bf16.msra.mxu0 %v592_v32 }
 0x191   : > { %v571_v37 = vpop.permute.xlu1 %570 }
 0x192   : > { %v575_v38 = vsel %vm572_vm10, %v569_v55, %v571_v37 }
 0x193   : > { %755 = vmatmul.mubr.msk.bf16.vlgmr.msra.gmra.mxu0 %vm586_vm12, %v582_v35  ;;  %v581_v39 = vadd.f32 %v575_v38, %v551_v36 }
 0x195   : > { %v585_v40 = vpack.c.bf16 %v581_v39, %v581_v39 }
 0x197   : > { %v598_v41 = vsel %vm590_vm11, %v585_v40, 0 }
 0x198   : > { %763 = vmatpush3.bf16.msra.mxu1 %v598_v41 }
 0x19b   : > { %765 = vmatmul.mubr.msk.bf16.vlgmr.msra.gmra.mxu1 %vm586_vm12, %v582_v35 }
 0x253   : > { %v634_v42 = vpop.f32.mrf.mxu0 }
 0x254   : > { %v681_v43 = vmax.f32 %v634_v42, 0.0 }
 0x255   : > { %v636_v44 = vpop.f32.mrf.mxu0 }
 0x256   : > { %684 = vst [vmem:[%s197_s12] sm:$0xff] %v681_v43  ;;  %v682_v45 = vmax.f32 %v636_v44, 0.0 }
 0x257   : > { %v638_v46 = vpop.f32.mrf.mxu0 }
 0x258   : > { %685 = vst [vmem:[%s197_s12 + $0x8] sm:$0xff] %v682_v45 }
 0x259   : > { %v639_v47 = vpop.f32.mrf.mxu0 }
 0x25b   : > { %v675_v48 = vpop.f32.mrf.mxu1 }
 0x25c   : > { %v683_v29 = vmax.f32 %v675_v48, 0.0 }
 0x25d   : > { %v766_v49 = vpop.f32.mrf.mxu1 }
 0x25e   : > { %686 = vst [vmem:[%s197_s12 + $0x10] sm:$0xff] %v683_v29 }
 0x25f   : > { %v678_v50 = vpop.f32.mrf.mxu1 }
 0x261   : > { %v767_v51 = vpop.f32.mrf.mxu1 }
 0x262 PF: > { %s14_s15 = sadd.s32 1, %s814_s15  }
 0x263   : > { %p11_p4 = scmp.ge.s32.totalorder %s14_s15, 4  }
 0x265   :  { %13 = sbr.rel (!%p11_p4) target bundleno = 1 (0x1), region = 66 }

</bundles_post_ra>
